<compile_context>
chip_gen: v5e
topology: v5e:2x2
jax: 0.10.0
libtpu: 0.0.40
codegen_flags: <defaults>
</compile_context>

<pallas_src>
import jax
import jax.numpy as jnp
from jax import lax
from jax.experimental import pallas as pl
from jax.experimental.pallas import tpu as pltpu

_LANE = 128
_MIB = 1024 * 1024


def _round_up(x, m):
    return ((x + m - 1) // m) * m


def _vmem_capacity_bytes():
    """Physical per-core VMEM; conservative fallback = v7x per-TC (64 MiB)."""
    try:
        cap = int(pltpu.get_tpu_info().vmem_capacity_bytes)
    except Exception:
        cap = 64 * _MIB
    return max(cap, 32 * _MIB)


def _choose_tiles(batch, d, itemsize, *, tb_max=4096):
    """Pick (TB, TD) batch/feature tile sizes and return VMEM capacity."""
    cap = _vmem_capacity_bytes()
    # Scoped-VMEM budget: generous but leaves headroom.  <= 48 MiB everywhere
    # (v7x: 64 MiB physical; v5e/v6e: 128 MiB).  Diminishing returns past
    # ~8-12 MiB per x buffer, so cap the per-buffer size there.
    budget_total = min(48 * _MIB, cap * 3 // 4)
    per_buf = max(1 * _MIB, min(12 * _MIB, (budget_total - 2 * _MIB) // 2))

    # Feature tile: only split D when it is 128-divisible AND even a minimal
    # 128-row batch tile would overflow the per-buffer budget.
    if d % _LANE == 0 and _LANE * d * itemsize > per_buf:
        td = max(_LANE, (per_buf // (_LANE * itemsize)) // _LANE * _LANE)
    else:
        td = d

    # Batch tile: biggest multiple of 128 fitting the per-buffer budget.
    tb_fit = max(_LANE, (per_buf // max(td * itemsize, 1)) // _LANE * _LANE)
    tb = min(tb_fit, tb_max, _round_up(batch, _LANE))

    # Keep >= 2 grid steps along the batch axis when possible, so the
    # "parallel" axis can shard across both v7x TensorCores (and the pipeline
    # has something to overlap on single-TC chips).
    while tb > _LANE and pl.cdiv(batch, tb) < 2:
        tb = max(_LANE, _round_up(tb // 2, _LANE))

    return tb, td, cap


def perceptron_kernel(x_ref, w_ref, b_ref, o_ref, acc_ref):
    """One (batch-tile, feature-tile) grid step.

    x_ref:   (TB, TD) VMEM -- batch tile, native dtype (bf16 goes straight to MXU)
    w_ref:   (1, TD)  VMEM -- PyTorch Linear weight layout slice
    b_ref:   (1,)     SMEM -- bias scalar
    o_ref:   (1, TB)  VMEM -- lane-dense logits row for this batch tile
    acc_ref: (1, TB)  VMEM -- f32 accumulator (feature-axis reduction)
    """
    k = pl.program_id(1)

    @pl.when(k == 0)
    def _init():
        acc_ref[...] = jnp.zeros_like(acc_ref)

    # z_partial = w @ x^T -> (1, TB): lane-dense A @ B^T contraction on the
    # MXU with f32 accumulation; no materialized transpose, no f32 upcast of
    # the inputs.
    acc_ref[...] += lax.dot_general(
        w_ref[...], x_ref[...],
        dimension_numbers=(((1,), (1,)), ((), ())),
        preferred_element_type=jnp.float32,
    )

    @pl.when(k == pl.num_programs(1) - 1)
    def _finish():
        z = acc_ref[...] + b_ref[0]
        o_ref[...] = jax.nn.sigmoid(z).astype(o_ref.dtype)


def perceptron_forward(x, weight, bias, *, tb=None, td=None, tb_max=4096):
    """x: (B, D), weight: (1, D), bias: (1,) -> (B, 1) = sigmoid(x @ W^T + b)."""
    B, D = x.shape
    itemsize = jnp.dtype(x.dtype).itemsize

    # Keep x in its caller-supplied dtype (bf16 stays bf16: halves HBM traffic
    # on this mem-bound kernel).  Cast only the tiny weight to match.
    weight = jnp.asarray(weight, dtype=x.dtype).reshape(1, D)
    bias_smem = jnp.asarray(bias, dtype=jnp.float32).reshape(1)

    auto_tb, auto_td, cap = _choose_tiles(B, D, itemsize, tb_max=tb_max)
    TB = auto_tb if tb is None else tb
    TD = auto_td if td is None else td

    grid = (pl.cdiv(B, TB), pl.cdiv(D, TD))

    # Worst-case resident VMEM: double-buffered x and weight tiles, output
    # row, f32 accumulator, plus slack.  Raise the scoped-VMEM limit to cover
    # it (v5e default is only 16 MiB) while staying inside physical VMEM.
    need = (2 * TB * TD * itemsize + 2 * TD * itemsize
            + 2 * TB * itemsize + TB * 4 + 2 * _MIB)
    vmem_limit = int(min(max(need, 48 * _MIB), cap - 2 * _MIB))
    # TODO(synk): if `need` still exceeds physical VMEM (non-128-divisible D
    # in the tens of millions), pad D to a multiple of 128 upstream so the
    # feature axis can be tiled.

    out_row = pl.pallas_call(
        perceptron_kernel,
        out_shape=jax.ShapeDtypeStruct((1, B), x.dtype),
        grid=grid,
        in_specs=[
            pl.BlockSpec((TB, TD), lambda i, k: (i, k)),        # pipelined x tile
            pl.BlockSpec((1, TD), lambda i, k: (0, k)),         # weight slice (revisited over i)
            pl.BlockSpec(memory_space=pltpu.MemorySpace.SMEM),  # bias scalar in SMEM
        ],
        out_specs=pl.BlockSpec((1, TB), lambda i, k: (0, i)),   # lane-dense output row
        scratch_shapes=[pltpu.VMEM((1, TB), jnp.float32)],      # f32 accumulator
        compiler_params=pltpu.CompilerParams(
            dimension_semantics=("parallel", "arbitrary"),      # megacore on batch, reduce on D
            vmem_limit_bytes=vmem_limit,
        ),
        cost_estimate=pl.CostEstimate(
            flops=2 * B * D,
            transcendentals=B,
            bytes_accessed=B * D * itemsize + D * itemsize + B * itemsize + 4,
        ),
    )(x, weight, bias_smem)

    # (1, B) -> (B, 1); nothing ever reduces over padded/partial-block lanes.
    return out_row.reshape(B, 1)


if __name__ == "__main__":
    key = jax.random.PRNGKey(0)
    k_x, k_w, k_b, k_x2 = jax.random.split(key, 4)

    def init_params(kw, kb, d):
        # Deterministic init mimicking nn.Linear: U(-1/sqrt(D), 1/sqrt(D))
        bound = 1.0 / (d ** 0.5)
        w = jax.random.uniform(kw, (1, d), dtype=jnp.float32,
                               minval=-bound, maxval=bound)
        b = jax.random.uniform(kb, (1,), dtype=jnp.float32,
                               minval=-bound, maxval=bound)
        return w, b

    def reference(x, w, b):
        xf = x.astype(jnp.float32)
        wf = w.astype(jnp.float32)
        return jax.nn.sigmoid(xf @ wf.T + b[None, :].astype(jnp.float32))

    # Test 1: module-sized problem (batch=8, input_size=32), f32, auto tiling.
    B, D = 8, 32
    x = jax.random.normal(k_x, (B, D), dtype=jnp.float32)
    w, b = init_params(k_w, k_b, D)
    out = jax.block_until_ready(perceptron_forward(x, w, b))
    assert out.shape == (B, 1)
    assert jnp.allclose(out, reference(x, w, b), atol=1e-4, rtol=1e-4)

    # Test 2: partial last batch block + feature-axis reduction path
    # (no jnp.pad anywhere; B=300 is not a multiple of the 128-row tile).
    B2, D2 = 300, 256
    x2 = jax.random.normal(k_x2, (B2, D2), dtype=jnp.float32)
    w2, b2 = init_params(k_w, k_b, D2)
    out2 = jax.block_until_ready(perceptron_forward(x2, w2, b2, tb=128, td=128))
    assert out2.shape == (B2, 1)
    assert jnp.allclose(out2, reference(x2, w2, b2), atol=5e-3, rtol=5e-3)

    # Test 3: bf16 end-to-end (halved HBM traffic), f32 MXU accumulation.
    x3 = x2.astype(jnp.bfloat16)
    w3 = w2.astype(jnp.bfloat16)
    out3 = jax.block_until_ready(perceptron_forward(x3, w3, b2))
    assert out3.shape == (B2, 1)
    assert out3.dtype == jnp.bfloat16
    assert jnp.allclose(out3.astype(jnp.float32), reference(x3, w3, b2),
                        atol=2e-2, rtol=2e-2)

    print("KERNEL_OK")
</pallas_src>

<mosaic_0001>
module attributes {stable_mosaic.version = 11 : i64} {
  func.func @perceptron_kernel(%arg0: i32, %arg1: i32, %arg2: memref<128x32xf32, #tpu.memory_space<vmem>>, %arg3: memref<1x32xf32, #tpu.memory_space<vmem>>, %arg4: memref<1xf32, #tpu.memory_space<smem>>, %arg5: memref<1x128xf32, #tpu.memory_space<vmem>>, %arg6: memref<1x128xf32, #tpu.memory_space<vmem>>) attributes {dimension_semantics = [#tpu.dimension_semantics<parallel>, #tpu.dimension_semantics<arbitrary>], iteration_bounds = array<i64: 1, 1>, scalar_prefetch = 0 : i64, scratch_operands = 1 : i64, tpu.core_type = #tpu.core_type<tc>, window_params = [{transform_indices = @transform_0, window_bounds = array<i64: 128, 32>}, {transform_indices = @transform_1, window_bounds = array<i64: 1, 32>}, {transform_indices = @transform_2, window_bounds = array<i64: 1>}, {transform_indices = @transform_3, window_bounds = array<i64: 1, 128>}]} {
    %c0_i32 = arith.constant 0 : i32
    %0 = arith.cmpi eq, %arg1, %c0_i32 : i32
    %1 = arith.extui %0 : i1 to i32
    %c0_i32_0 = arith.constant 0 : i32
    %2 = arith.cmpi ne, %1, %c0_i32_0 : i32
    scf.if %2 {
      %cst_10 = arith.constant 0.000000e+00 : f32
      %12 = vector.broadcast %cst_10 : f32 to vector<1x128xf32>
      %c0_11 = arith.constant 0 : index
      %c0_12 = arith.constant 0 : index
      %13 = vector.load %arg6[%c0_11, %c0_12] : memref<1x128xf32, #tpu.memory_space<vmem>>, vector<1x128xf32>
      tpu.vector_store %arg6[%c0_11, %c0_12], %12 {strides = array<i32>} : memref<1x128xf32, #tpu.memory_space<vmem>>, vector<1x128xf32>,
    } else {
    }
    %c0 = arith.constant 0 : index
    %c0_1 = arith.constant 0 : index
    %3 = vector.load %arg6[%c0, %c0_1] : memref<1x128xf32, #tpu.memory_space<vmem>>, vector<1x128xf32>
    %c0_2 = arith.constant 0 : index
    %c0_3 = arith.constant 0 : index
    %4 = vector.load %arg3[%c0_2, %c0_3] : memref<1x32xf32, #tpu.memory_space<vmem>>, vector<1x32xf32>
    %c0_4 = arith.constant 0 : index
    %c0_5 = arith.constant 0 : index
    %5 = vector.load %arg2[%c0_4, %c0_5] : memref<128x32xf32, #tpu.memory_space<vmem>>, vector<128x32xf32>
    %cst = arith.constant dense<0.000000e+00> : vector<1x128xf32>
    %6 = tpu.matmul %4, %5, %cst {dimension_numbers = #tpu.dot_dimension_numbers<[1], [1], [0], [0], [0, 0, 1, 0], [], []>} : vector<1x32xf32>, vector<128x32xf32>, vector<1x128xf32> -> vector<1x128xf32>
    %7 = arith.addf %3, %6 : vector<1x128xf32>
    %c0_6 = arith.constant 0 : index
    %c0_7 = arith.constant 0 : index
    %8 = vector.load %arg6[%c0_6, %c0_7] : memref<1x128xf32, #tpu.memory_space<vmem>>, vector<1x128xf32>
    tpu.vector_store %arg6[%c0_6, %c0_7], %7 {strides = array<i32>} : memref<1x128xf32, #tpu.memory_space<vmem>>, vector<1x128xf32>,
    %c0_i32_8 = arith.constant 0 : i32
    %9 = arith.cmpi eq, %arg1, %c0_i32_8 : i32
    %10 = arith.extui %9 : i1 to i32
    %c0_i32_9 = arith.constant 0 : i32
    %11 = arith.cmpi ne, %10, %c0_i32_9 : i32
    scf.if %11 {
      %c0_10 = arith.constant 0 : index
      %c0_11 = arith.constant 0 : index
      %12 = vector.load %arg6[%c0_10, %c0_11] : memref<1x128xf32, #tpu.memory_space<vmem>>, vector<1x128xf32>
      %c0_12 = arith.constant 0 : index
      %13 = memref.load %arg4[%c0_12] : memref<1xf32, #tpu.memory_space<smem>>
      %14 = vector.broadcast %13 : f32 to vector<1x128xf32>
      %15 = arith.addf %12, %14 : vector<1x128xf32>
      %16 = arith.negf %15 : vector<1x128xf32>
      %17 = math.exp %16 : vector<1x128xf32>
      %cst_13 = arith.constant 1.000000e+00 : f32
      %18 = vector.broadcast %cst_13 : f32 to vector<1x128xf32>
      %19 = arith.addf %18, %17 : vector<1x128xf32>
      %20 = arith.divf %18, %19 : vector<1x128xf32>
      %c0_14 = arith.constant 0 : index
      %c0_15 = arith.constant 0 : index
      %21 = vector.load %arg5[%c0_14, %c0_15] : memref<1x128xf32, #tpu.memory_space<vmem>>, vector<1x128xf32>
      tpu.vector_store %arg5[%c0_14, %c0_15], %20 {strides = array<i32>} : memref<1x128xf32, #tpu.memory_space<vmem>>, vector<1x128xf32>,
    } else {
    }
    return
  }
  func.func @transform_0(%arg0: i32, %arg1: i32) -> (i32, i32) {
    %c0_i32 = arith.constant 0 : i32
    return %arg0, %arg1 : i32, i32
  }
  func.func @transform_1(%arg0: i32, %arg1: i32) -> (i32, i32) {
    %c0_i32 = arith.constant 0 : i32
    %c0_i32_0 = arith.constant 0 : i32
    return %c0_i32, %arg1 : i32, i32
  }
  func.func @transform_2(%arg0: i32, %arg1: i32) -> i32 {
    %c0_i32 = arith.constant 0 : i32
    %c0_i32_0 = arith.constant 0 : i32
    return %c0_i32 : i32
  }
  func.func @transform_3(%arg0: i32, %arg1: i32) -> (i32, i32) {
    %c0_i32 = arith.constant 0 : i32
    %c0_i32_0 = arith.constant 0 : i32
    return %c0_i32, %arg0 : i32, i32
  }
}

</mosaic_0001>

<bundles_post_ra>
// kernel: tpu_custom_call.1
= control target key start
LH: loop header
LB: loop body
LE: loop exit
PB: predicated region body
PF: predicated region fallthrough
CT: control target
= control target key end

     0   :  { %9 = vsyncpa [#allocation5], 0  ;;  %s306_s0 = inlined_call_operand.hbm [shape: f32[8,32], index: 0, kind: input, shape index: {}]   ;;  %s307_s1 = inlined_call_operand.vmem [shape: f32[1,32], index: 1, kind: input, shape index: {}]   ;;  %s308_s2 = inlined_call_operand.<no memory space> [shape: f32[1], index: 2, kind: input, shape index: {}]   ;;  %s309_s3 = inlined_call_operand.hbm [shape: f32[1,8], index: 3, kind: output, shape index: {}]  }
   0x1   :  { %10 = vsyncpa [#allocation6], 0 }
   0x2   :  { %14 = vsyncadd [#allocation5], 1920  ;;  %s15_s14 = sshll.u32 %s306_s0, 4  ;;  %s252_s15 = smov [#allocation4]   ;;  %s16_s14 = int_to_ptr.hbm [resolvable:$true] %s15_s14 }
   0x3   :  { %s17_s16 = sshll.u32 %s252_s15, 4  ;;  %s253_s17 = smov 128   ;;  %s18_s16 = int_to_ptr.vmem [resolvable:$true] %s17_s16 }
   0x4   :  { %s254_s18 = smov 8  }
   0x5   :  { %23 = dma.hbm_to_vmem [thread:$0]  %s16_s14, 128, %s18_s16, [#allocation5], %s253_s17, %s253_s17, %s254_s18  }
   0x6   :  { %248 = dma.done.wait [#allocation5], 2048  }
   0x7   :  { %249 = vsyncadd [#allocation5], 4294965248  ;;  %vm55_vm0 = vcmask 261120   ;;  %v54_v0 = vld [vmem:[#allocation4 + $0x78] sm:$0xff]  ;;  %v53_v1 = vld [vmem:[#allocation4 + $0x70] sm:$0xff]  ;;  %v255_v9 = vmov 0.0   ;;  %v134_v21 = vstv %s308_s2 }
   0x8   :  { %173 = vmatpush.xpose.msk.msra.mxu0 %vm55_vm0, %v54_v0  ;;  %v52_v2 = vld [vmem:[#allocation4 + $0x68] sm:$0xff]  ;;  %v51_v3 = vld [vmem:[#allocation4 + $0x60] sm:$0xff]  ;;  %v50_v4 = vld [vmem:[#allocation4 + $0x58] sm:$0xff]  ;;  %36 = vst [vmem:[#allocation2] sm:$0x1] %v255_v9  ;;  %s163_s2 = sshll.u32 %s309_s3, 4  ;;  %s164_s2 = int_to_ptr.hbm [resolvable:$true] %s163_s2 }
   0x9   :  { %v49_v5 = vld [vmem:[#allocation4 + $0x50] sm:$0xff]  ;;  %v48_v6 = vld [vmem:[#allocation4 + $0x48] sm:$0xff]  ;;  %v47_v7 = vld [vmem:[#allocation4 + $0x40] sm:$0xff] }
   0xa   :  { %v46_v8 = vld [vmem:[#allocation4 + $0x38] sm:$0xff]  ;;  %v45_v10 = vld [vmem:[#allocation4 + $0x30] sm:$0xff]  ;;  %v44_v11 = vld [vmem:[#allocation4 + $0x28] sm:$0xff] }
   0xb   :  { %v43_v12 = vld [vmem:[#allocation4 + $0x20] sm:$0xff]  ;;  %v42_v13 = vld [vmem:[#allocation4 + $0x18] sm:$0xff]  ;;  %v41_v14 = vld [vmem:[#allocation4 + $0x10] sm:$0xff] }
   0xc   :  { %174 = vmatpush.xpose.msk.msra.mxu0 %vm55_vm0, %v53_v1  ;;  %v40_v15 = vld [vmem:[#allocation4 + $0x8] sm:$0xff]  ;;  %v39_v16 = vld [vmem:[#allocation4] sm:$0xff]  ;;  %v38_v17 = vld [vmem:[%s307_s1] sm:$0x1]  ;;  %s256_s1 = smov [#allocation7]  }
   0xd   :  { %s161_s22 = sshll.u32 %s256_s1, 4  ;;  %s162_s22 = int_to_ptr.vmem [resolvable:$true] %s161_s22 }
   0xf   :  { %v37_v18 = vld [vmem:[#allocation2] sm:$0x1] }
  0x10   :  { %175 = vmatpush.xpose.msk.msra.mxu0 %vm55_vm0, %v52_v2 }
  0x14   :  { %176 = vmatpush.xpose.msk.msra.mxu0 %vm55_vm0, %v51_v3 }
  0x18   :  { %177 = vmatpush.xpose.msk.msra.mxu0 %vm55_vm0, %v50_v4 }
  0x1c   :  { %178 = vmatpush.xpose.msk.msra.mxu0 %vm55_vm0, %v49_v5 }
  0x20   :  { %179 = vmatpush.xpose.msk.msra.mxu0 %vm55_vm0, %v48_v6 }
  0x24   :  { %180 = vmatpush.xpose.msk.msra.mxu0 %vm55_vm0, %v47_v7 }
  0x28   :  { %181 = vmatpush.xpose.msk.msra.mxu0 %vm55_vm0, %v46_v8 }
  0x2c   :  { %182 = vmatpush.xpose.msk.msra.mxu0 %vm55_vm0, %v45_v10 }
  0x30   :  { %183 = vmatpush.xpose.msk.msra.mxu0 %vm55_vm0, %v44_v11 }
  0x34   :  { %184 = vmatpush.xpose.msk.msra.mxu0 %vm55_vm0, %v43_v12 }
  0x38   :  { %185 = vmatpush.xpose.msk.msra.mxu0 %vm55_vm0, %v42_v13 }
  0x3c   :  { %186 = vmatpush.xpose.msk.msra.mxu0 %vm55_vm0, %v41_v14 }
  0x40   :  { %187 = vmatpush.xpose.msk.msra.mxu0 %vm55_vm0, %v40_v15 }
  0x44   :  { %188 = vmatpush.xpose.msk.msra.mxu0 %vm55_vm0, %v39_v16 }
  0x47   :  { %189 = vmatmul.msk.f32.vlgmr.msra.gmra.mxu0 %vm55_vm0, %v38_v17 }
  0xc4   :  { %v124_v19 = vpop.f32.mrf.mxu0 }
  0xc5   :  { %v127_v20 = vadd.f32 %v124_v19, %v37_v18 }
  0xc7   :  { %128 = vst [vmem:[#allocation2] sm:$0x1] %v127_v20 }
  0xce   :  { %v132_v22 = vld [vmem:[#allocation2] sm:$0x1] }
  0xcf   :  { %v135_v23 = vadd.f32 %v134_v21, %v132_v22 }
  0xd1   :  { %v190_v24 = vmul.f32 -1.442695, %v135_v23 }
  0xd3   :  { %196 = vpow2.f32 %v190_v24 }
  0xd9   :  { %v197_v25 = vpop.eup %196 }
  0xda   :  { %v139_v26 = vadd.f32 1.0, %v197_v25 }
  0xdc   :  { %198 = vrcp.f32 %v139_v26  ;;  %v151_v30 = vand.u32 2147483648, %v139_v26  ;;  %v149_v32 = vand.u32 2147483647, %v139_v26  ;;  %vm145_vm2 = vweird.f32 %v139_v26 }
  0xde   :  { %v152_v34 = vor.u32 1.1754944e-38, %v151_v30  ;;  %vm150_vm4 = vcmp.eq.f32.partialorder %v149_v32, 8.507059e+37 }
  0xe2   :  { %v199_v27 = vpop.eup %198 }
  0xe3   :  { %v141_v28 = vmul.f32 %v199_v27, %v139_v26  ;;  %vm146_vm1 = vweird.f32 %v199_v27 }
  0xe4   :  { %vm147_vm3 = vmor %vm145_vm2, %vm146_vm1 }
  0xe5   :  { %v142_v29 = vsub.f32 1.0, %v141_v28 }
  0xe7   :  { %v143_v31 = vmul.f32 %v199_v27, %v142_v29 }
  0xe9   :  { %v144_v33 = vadd.f32 %v199_v27, %v143_v31 }
  0xeb   :  { %v148_v35 = vsel %vm147_vm3, %v199_v27, %v144_v33 }
  0xec   :  { %v153_v36 = vsel %vm150_vm4, %v152_v34, %v148_v35 }
  0xed   :  { %155 = vst [vmem:[#allocation7] sm:$0x1] %v153_v36 }
  0xee   :  { %166 = dma.vmem_to_hbm [thread:$0]  %s162_s22, 16, %s164_s2, [#allocation6]  }
  0xef   :  { %250 = dma.done.wait [#allocation6], 16  }
  0xf0   :  { %251 = vsyncadd [#allocation6], 4294967280 }
  0xf1   :  { %171 = vsyncpa [#allocation5], 1 }
  0xf2   :  { %172 = vsyncpa [#allocation6], 1 }

</bundles_post_ra>
